<compile_context>
chip_gen: v6e
topology: v6e:2x2x1
jax: 0.10.0
libtpu: 0.0.40
codegen_flags: <defaults>
</compile_context>

<pallas_src>
import functools

import jax
import jax.numpy as jnp
from jax.experimental import pallas as pl
from jax.experimental.pallas import tpu as pltpu


def _pow_gamma(x, gamma):
    """x ** gamma specialized at trace time (gamma is a Python float).

    Returns None when gamma == 0 (caller skips the multiply entirely).
    """
    if gamma == 0.0:
        return None
    gi = int(gamma)
    if float(gi) == gamma and 1 <= gi <= 8:
        r = x
        for _ in range(gi - 1):
            r = r * x            # VPU multiplies, no EUP traffic
        return r
    return jnp.power(x, gamma)   # non-integer gamma: EUP fallback


def _focal_loss_kernel(logit_ref, target_ref, out_ref, acc_ref, *,
                       gamma, t_valid, row_tile, lanes, nblk,
                       need_mask, need_skip):
    c = pl.program_id(0)          # "core" axis (megacore split on v7x)
    j = pl.program_id(1)          # streaming row-block index within this core
    bpc = pl.num_programs(1)
    g = c * bpc + j               # global row-block index

    @pl.when(j == 0)
    def _():
        acc_ref[...] = jnp.zeros_like(acc_ref)

    # Upcast storage dtype -> f32 for the math (hidden under DMA).
    p = logit_ref[...].astype(jnp.float32)
    t = target_ref[...].astype(jnp.float32)

    # pos_pt = p ; neg_pt = 1 - p   (matches the PyTorch forward exactly)
    log_p = jnp.log(p)
    log_q = jnp.log(1.0 - p)
    w_pos = _pow_gamma(1.0 - p, gamma)   # (1 - pos_pt) ** gamma
    w_neg = _pow_gamma(p, gamma)         # (1 - neg_pt) ** gamma
    pos_loss = (log_p if w_pos is None else w_pos * log_p) * t
    neg_loss = (log_q if w_neg is None else w_neg * log_q) * (1.0 - t)
    loss = -(pos_loss + neg_loss)

    # Vector accumulation (VPU only in the hot loop). Masking / skipping is
    # only emitted when the shapes actually require it (static Python flags).
    if need_mask:
        last = nblk - 1

        @pl.when(g == last)
        def _():
            r = jax.lax.broadcasted_iota(jnp.int32, loss.shape, 0)
            col = jax.lax.broadcasted_iota(jnp.int32, loss.shape, 1)
            flat = (g * row_tile + r) * lanes + col
            acc_ref[...] += jnp.where(flat < t_valid, loss, 0.0)

        @pl.when(jnp.logical_and(g != last, g < nblk))
        def _():
            acc_ref[...] += loss
    elif need_skip:
        @pl.when(g < nblk)
        def _():
            acc_ref[...] += loss
    else:
        acc_ref[...] += loss

    # One cross-lane/sublane reduce per core, at the very end.
    @pl.when(j == bpc - 1)
    def _():
        out_ref[...] = jnp.full(out_ref.shape, jnp.sum(acc_ref[...]),
                                dtype=jnp.float32)


def focal_loss(logit, target, num_class, alpha=None, gamma=0.0,
               size_average=True, *, lanes=512, max_block_rows=512,
               num_cores=2):
    """Pallas implementation of FocalLoss.forward (returns a scalar)."""
    # ---- mirror FocalLoss.__init__ (alpha is never used by forward) ----
    if alpha is None:
        alpha = jnp.ones((1, num_class), dtype=jnp.float32)
    else:
        alpha = jnp.asarray(alpha, dtype=jnp.float32).reshape(num_class, 1)
        alpha = alpha / alpha.sum()
    del alpha  # unused in the reference forward pass

    batch_size = logit.shape[0]
    denom = float(batch_size) if size_average else 1.0

    # Flatten to 1D; the reduction is order-independent so any lane-dense 2D
    # re-layout is valid. Keep storage dtype; the kernel upcasts to f32.
    x = logit.reshape(-1)
    t = target.reshape(-1)
    total = x.shape[0]

    lanes = max(128, (lanes // 128) * 128)
    padded = pl.cdiv(total, lanes) * lanes
    if padded != total:
        # Only the ragged lane tail is padded; the kernel masks it out.
        x = jnp.pad(x, (0, padded - total), constant_values=0.5)
        t = jnp.pad(t, (0, padded - total), constant_values=0)
    rows = padded // lanes

    x2 = x.reshape(rows, lanes)
    t2 = t.reshape(rows, lanes)

    # Row tiling: full rows when small (always a legal block), otherwise a
    # large 8-aligned tile (~1 MiB f32 blocks by default — well inside the
    # scoped-VMEM budgets of v5e/v6e/v7x with double buffering).
    if rows <= max_block_rows:
        row_tile = rows
    else:
        row_tile = max(8, (max_block_rows // 8) * 8)
    nblk = pl.cdiv(rows, row_tile)

    # Split row blocks across TensorCores (v7x has 2 TCs; on v5e/v6e the
    # leading "parallel" axis just runs sequentially).
    ncores = max(1, min(num_cores, nblk))
    bpc = pl.cdiv(nblk, ncores)
    need_skip = (bpc * ncores != nblk)
    need_mask = (padded != total) or (rows % row_tile != 0)

    if need_skip:
        def in_map(c, j):
            return (jnp.minimum(c * bpc + j, nblk - 1), 0)
    else:
        def in_map(c, j):
            return (c * bpc + j, 0)

    kernel = functools.partial(
        _focal_loss_kernel,
        gamma=float(gamma), t_valid=total, row_tile=row_tile, lanes=lanes,
        nblk=nblk, need_mask=need_mask, need_skip=need_skip,
    )

    out = pl.pallas_call(
        kernel,
        out_shape=jax.ShapeDtypeStruct((ncores, 8, 128), jnp.float32),
        grid_spec=pltpu.PrefetchScalarGridSpec(
            num_scalar_prefetch=0,
            grid=(ncores, bpc),
            in_specs=[
                pl.BlockSpec((row_tile, lanes), in_map),
                pl.BlockSpec((row_tile, lanes), in_map),
            ],
            out_specs=pl.BlockSpec((1, 8, 128), lambda c, j: (c, 0, 0)),
            scratch_shapes=[pltpu.VMEM((row_tile, lanes), jnp.float32)],
        ),
        compiler_params=pltpu.CompilerParams(
            dimension_semantics=("parallel", "arbitrary"),
        ),
    )(x2, t2)

    # Combine per-core partial sums and apply the batch normalization.
    return out[:, 0, 0].sum() / denom


def focal_loss_ref(logit, target, gamma=0.0, size_average=True):
    """Pure-JAX reference mirroring the PyTorch forward."""
    B = logit.shape[0]
    p = logit.reshape(B, -1).astype(jnp.float32)
    t = target.reshape(B, -1).astype(jnp.float32)
    pos = jnp.power(1.0 - p, gamma) * jnp.log(p) * t
    neg = jnp.power(p, gamma) * jnp.log(1.0 - p) * (1.0 - t)
    loss = -1.0 * (pos + neg)
    s = loss.sum()
    return s / B if size_average else s


if __name__ == "__main__":
    key = jax.random.PRNGKey(0)
    k1, k2 = jax.random.split(key)

    B, C, H, W = 2, 4, 16, 16
    # logits are treated as probabilities (log is applied directly) -> sigmoid
    logit = jax.nn.sigmoid(jax.random.normal(k1, (B, C, H, W), jnp.float32))
    target = (jax.random.uniform(k2, (B, C, H, W)) > 0.5).astype(jnp.float32)

    # 1) default path (gamma = 0, divisible sizes, single large block)
    out = jax.block_until_ready(focal_loss(logit, target, num_class=C))
    ref = focal_loss_ref(logit, target)
    assert jnp.allclose(out, ref, rtol=1e-4, atol=1e-4), (out, ref)

    # 2) integer gamma specialization (repeated multiplies, no EUP pow)
    out2 = jax.block_until_ready(
        focal_loss(logit, target, num_class=C, gamma=2.0))
    ref2 = focal_loss_ref(logit, target, gamma=2.0)
    assert jnp.allclose(out2, ref2, rtol=1e-4, atol=1e-4), (out2, ref2)

    # 3) ragged size -> lane-tail padding + in-kernel mask on the last block
    k3, k4 = jax.random.split(k2)
    lo3 = jax.nn.sigmoid(jax.random.normal(k3, (2, 3, 7, 5), jnp.float32))
    ta3 = (jax.random.uniform(k4, (2, 3, 7, 5)) > 0.5).astype(jnp.float32)
    out3 = jax.block_until_ready(focal_loss(lo3, ta3, num_class=3))
    ref3 = focal_loss_ref(lo3, ta3)
    assert jnp.allclose(out3, ref3, rtol=1e-4, atol=1e-4), (out3, ref3)

    # 4) multi-block + 2-way core split with an odd block count (clamp + skip)
    k5, k6 = jax.random.split(k3)
    lo4 = jax.nn.sigmoid(jax.random.normal(k5, (2, 3, 16, 32), jnp.float32))
    ta4 = (jax.random.uniform(k6, (2, 3, 16, 32)) > 0.5).astype(jnp.float32)
    out4 = jax.block_until_ready(
        focal_loss(lo4, ta4, num_class=3, lanes=128, max_block_rows=8))
    ref4 = focal_loss_ref(lo4, ta4)
    assert jnp.allclose(out4, ref4, rtol=1e-4, atol=1e-4), (out4, ref4)

    # 5) compressed storage dtypes (bf16 in HBM, f32 math inside the kernel)
    lob = logit.astype(jnp.bfloat16)
    tab = target.astype(jnp.bfloat16)
    out5 = jax.block_until_ready(focal_loss(lob, tab, num_class=C))
    ref5 = focal_loss_ref(lob.astype(jnp.float32), tab.astype(jnp.float32))
    assert jnp.allclose(out5, ref5, rtol=1e-4, atol=1e-4), (out5, ref5)

    print("KERNEL_OK")
</pallas_src>

<mosaic_0001>
module attributes {stable_mosaic.version = 11 : i64} {
  func.func @_focal_loss_kernel(%arg0: i32, %arg1: i32, %arg2: memref<4x512xf32, #tpu.memory_space<vmem>>, %arg3: memref<4x512xf32, #tpu.memory_space<vmem>>, %arg4: memref<1x8x128xf32, #tpu.memory_space<vmem>>, %arg5: memref<4x512xf32, #tpu.memory_space<vmem>>) attributes {dimension_semantics = [#tpu.dimension_semantics<parallel>, #tpu.dimension_semantics<arbitrary>], iteration_bounds = array<i64: 1, 1>, scalar_prefetch = 0 : i64, scratch_operands = 1 : i64, tpu.core_type = #tpu.core_type<tc>, window_params = [{transform_indices = @transform_0, window_bounds = array<i64: 4, 512>}, {transform_indices = @transform_1, window_bounds = array<i64: 4, 512>}, {transform_indices = @transform_2, window_bounds = array<i64: 1, 8, 128>}]} {
    %c0_i32 = arith.constant 0 : i32
    %0 = arith.cmpi eq, %arg1, %c0_i32 : i32
    %1 = arith.extui %0 : i1 to i32
    %c0_i32_0 = arith.constant 0 : i32
    %2 = arith.cmpi ne, %1, %c0_i32_0 : i32
    scf.if %2 {
      %cst_12 = arith.constant 0.000000e+00 : f32
      %22 = vector.broadcast %cst_12 : f32 to vector<4x512xf32>
      %c0_13 = arith.constant 0 : index
      %c0_14 = arith.constant 0 : index
      %23 = vector.load %arg5[%c0_13, %c0_14] : memref<4x512xf32, #tpu.memory_space<vmem>>, vector<4x512xf32>
      tpu.vector_store %arg5[%c0_13, %c0_14], %22 {strides = array<i32>} : memref<4x512xf32, #tpu.memory_space<vmem>>, vector<4x512xf32>,
    } else {
    }
    %c0 = arith.constant 0 : index
    %c0_1 = arith.constant 0 : index
    %3 = vector.load %arg2[%c0, %c0_1] : memref<4x512xf32, #tpu.memory_space<vmem>>, vector<4x512xf32>
    %c0_2 = arith.constant 0 : index
    %c0_3 = arith.constant 0 : index
    %4 = vector.load %arg3[%c0_2, %c0_3] : memref<4x512xf32, #tpu.memory_space<vmem>>, vector<4x512xf32>
    %5 = math.log %3 : vector<4x512xf32>
    %cst = arith.constant 1.000000e+00 : f32
    %6 = vector.broadcast %cst : f32 to vector<4x512xf32>
    %7 = arith.subf %6, %3 : vector<4x512xf32>
    %8 = math.log %7 : vector<4x512xf32>
    %9 = arith.mulf %5, %4 : vector<4x512xf32>
    %cst_4 = arith.constant 1.000000e+00 : f32
    %10 = vector.broadcast %cst_4 : f32 to vector<4x512xf32>
    %11 = arith.subf %10, %4 : vector<4x512xf32>
    %12 = arith.mulf %8, %11 : vector<4x512xf32>
    %13 = arith.addf %9, %12 : vector<4x512xf32>
    %cst_5 = arith.constant 0.000000e+00 : f32
    %14 = vector.broadcast %cst_5 : f32 to vector<4x512xf32>
    %15 = arith.subf %14, %13 : vector<4x512xf32>
    %c0_6 = arith.constant 0 : index
    %c0_7 = arith.constant 0 : index
    %16 = vector.load %arg5[%c0_6, %c0_7] : memref<4x512xf32, #tpu.memory_space<vmem>>, vector<4x512xf32>
    %17 = arith.addf %16, %15 : vector<4x512xf32>
    %c0_8 = arith.constant 0 : index
    %c0_9 = arith.constant 0 : index
    %18 = vector.load %arg5[%c0_8, %c0_9] : memref<4x512xf32, #tpu.memory_space<vmem>>, vector<4x512xf32>
    tpu.vector_store %arg5[%c0_8, %c0_9], %17 {strides = array<i32>} : memref<4x512xf32, #tpu.memory_space<vmem>>, vector<4x512xf32>,
    %c0_i32_10 = arith.constant 0 : i32
    %19 = arith.cmpi eq, %arg1, %c0_i32_10 : i32
    %20 = arith.extui %19 : i1 to i32
    %c0_i32_11 = arith.constant 0 : i32
    %21 = arith.cmpi ne, %20, %c0_i32_11 : i32
    scf.if %21 {
      %c0_12 = arith.constant 0 : index
      %c0_13 = arith.constant 0 : index
      %22 = vector.load %arg5[%c0_12, %c0_13] : memref<4x512xf32, #tpu.memory_space<vmem>>, vector<4x512xf32>
      %23 = vector.shape_cast %22 : vector<4x512xf32> to vector<1x4x512xf32>
      %cst_14 = arith.constant dense<0.000000e+00> : vector<1xf32>
      %24 = vector.multi_reduction <add>, %23, %cst_14 [1, 2] : vector<1x4x512xf32> to vector<1xf32>
      %25 = vector.shape_cast %24 : vector<1xf32> to vector<1x1x1xf32>
      %26 = vector.extract %25[0, 0, 0] : f32 from vector<1x1x1xf32>
      %27 = vector.broadcast %26 : f32 to vector<1x8x128xf32>
      %c0_15 = arith.constant 0 : index
      %c0_16 = arith.constant 0 : index
      %c0_17 = arith.constant 0 : index
      %28 = vector.load %arg4[%c0_15, %c0_16, %c0_17] : memref<1x8x128xf32, #tpu.memory_space<vmem>>, vector<1x8x128xf32>
      tpu.vector_store %arg4[%c0_15, %c0_16, %c0_17], %27 {strides = array<i32>} : memref<1x8x128xf32, #tpu.memory_space<vmem>>, vector<1x8x128xf32>,
    } else {
    }
    return
  }
  func.func @transform_0(%arg0: i32, %arg1: i32) -> (i32, i32) {
    %c1_i32 = arith.constant 1 : i32
    %0 = arith.muli %arg0, %c1_i32 : i32
    %1 = arith.addi %0, %arg1 : i32
    %c0_i32 = arith.constant 0 : i32
    %c0_i32_0 = arith.constant 0 : i32
    return %1, %c0_i32 : i32, i32
  }
  func.func @transform_1(%arg0: i32, %arg1: i32) -> (i32, i32) {
    %c1_i32 = arith.constant 1 : i32
    %0 = arith.muli %arg0, %c1_i32 : i32
    %1 = arith.addi %0, %arg1 : i32
    %c0_i32 = arith.constant 0 : i32
    %c0_i32_0 = arith.constant 0 : i32
    return %1, %c0_i32 : i32, i32
  }
  func.func @transform_2(%arg0: i32, %arg1: i32) -> (i32, i32, i32) {
    %c0_i32 = arith.constant 0 : i32
    %c0_i32_0 = arith.constant 0 : i32
    %c0_i32_1 = arith.constant 0 : i32
    return %arg0, %c0_i32, %c0_i32_0 : i32, i32, i32
  }
}

</mosaic_0001>

<bundles_post_ra>
// kernel: tpu_custom_call.1
= control target key start
LH: loop header
LB: loop body
LE: loop exit
PB: predicated region body
PF: predicated region fallthrough
CT: control target
= control target key end

     0   :  { %7 = vsyncpa [#allocation4], 0  ;;  %s234_s0 = inlined_call_operand.hbm [shape: f32[4,512], index: 0, kind: input, shape index: {}]   ;;  %s235_s1 = inlined_call_operand.hbm [shape: f32[4,512], index: 1, kind: input, shape index: {}]   ;;  %s236_s2 = inlined_call_operand.hbm [shape: f32[1,8,128], index: 2, kind: output, shape index: {}]  }
   0x1   :  { %8 = vsyncpa [#allocation7], 0 }
   0x2   :  { %9 = vsyncpa [#allocation5], 0  ;;  %s207_s9 = smov [#allocation3]   ;;  %s208_s11 = smov [#allocation6]  }
   0x3   :  { %s20_s10 = sshll.u32 %s207_s9, 4  ;;  %s34_s12 = sshll.u32 %s208_s11, 4  ;;  %s21_s10 = int_to_ptr.vmem [resolvable:$true] %s20_s10  ;;  %s35_s12 = int_to_ptr.vmem [resolvable:$true] %s34_s12 }
   0x4   :  { %s149_s13 = scalar_lea.vmem %s21_s10, 256  ;;  %p154_p1 = scmp.lt.s32.totalorder %s21_s10, %s21_s10 }
   0x5   :  { %p150_p0 = scmp.ne.s32.totalorder %s21_s10, %s149_s13  ;;  %p155_p2 = scmp.lt.s32.totalorder %s149_s13, %s149_s13 }
   0x7   :  { %p156_p3 = por %p155_p2, %p154_p1 }
   0x9   :  { %p157_p4 = pnand %p156_p3, %p150_p0 }
   0xb   :  { %160 = shalt.err (!%p157_p4)
}
   0xc   :  { %23 = dma.hbm_to_vmem [thread:$0]  %s234_s0, 256, %s21_s10, [#allocation4]  }
   0xd   :  { %s169_s16 = scalar_lea.vmem %s35_s12, 256  ;;  %p174_p6 = scmp.lt.s32.totalorder %s35_s12, %s35_s12 }
   0xe   :  { %p170_p5 = scmp.ne.s32.totalorder %s35_s12, %s169_s16  ;;  %p175_p7 = scmp.lt.s32.totalorder %s169_s16, %s169_s16 }
  0x10   :  { %p176_p8 = por %p175_p7, %p174_p6 }
  0x12   :  { %p177_p9 = pnand %p176_p8, %p170_p5 }
  0x14   :  { %180 = shalt.err (!%p177_p9)
}
  0x15   :  { %37 = dma.hbm_to_vmem [thread:$0]  %s235_s1, 256, %s35_s12, [#allocation7]  }
  0x16   :  { %201 = dma.done.wait [#allocation4], 256  }
  0x17   :  { %202 = vsyncadd [#allocation4], 4294967040 }
  0x18   :  { %203 = dma.done.wait [#allocation7], 256  }
  0x19   :  { %204 = vsyncadd [#allocation7], 4294967040  ;;  %v52_v0 = vld [vmem:[#allocation3] sm:$0xff]  ;;  %v53_v1 = vld [vmem:[#allocation3 + $0x8] sm:$0xff]  ;;  %vm93_vm0 = vcmask 1043456   ;;  %s209_s0 = smov [#allocation8]  }
  0x1a   :  { %133 = vlog2.f32 %v52_v0  ;;  %v60_v2 = vsub.f32 1.0, %v52_v0  ;;  %v61_v3 = vsub.f32 1.0, %v53_v1  ;;  %v54_v4 = vld [vmem:[#allocation6] sm:$0xff]  ;;  %v55_v5 = vld [vmem:[#allocation6 + $0x8] sm:$0xff]  ;;  %s118_s1 = sshll.u32 %s209_s0, 4  ;;  %s119_s1 = int_to_ptr.vmem [resolvable:$true] %s118_s1 }
  0x1b   :  { %135 = vlog2.f32 %v53_v1  ;;  %v68_v9 = vsub.f32 1.0, %v54_v4  ;;  %v69_v12 = vsub.f32 1.0, %v55_v5  ;;  %s181_s20 = scalar_lea.vmem %s119_s1, 128  ;;  %p186_p11 = scmp.lt.s32.totalorder %s119_s1, %s119_s1 }
  0x1c   :  { %137 = vlog2.f32 %v60_v2  ;;  %p182_p10 = scmp.ne.s32.totalorder %s119_s1, %s181_s20  ;;  %p187_p12 = scmp.lt.s32.totalorder %s181_s20, %s181_s20 }
  0x1d   :  { %139 = vlog2.f32 %v61_v3 }
  0x1e   :  { %p188_p13 = por %p187_p12, %p186_p11 }
  0x20   :  { %p189_p0 = pnand %p188_p13, %p182_p10 }
  0x27   :  { %v134_v6 = vpop.eup %133 }
  0x28   :  { %v136_v7 = vpop.eup %135  ;;  %v57_v8 = vmul.f32 0.6931472, %v134_v6 }
  0x29   :  { %v138_v10 = vpop.eup %137  ;;  %v59_v11 = vmul.f32 0.6931472, %v136_v7 }
  0x2a   :  { %v140_v13 = vpop.eup %139  ;;  %v63_v14 = vmul.f32 0.6931472, %v138_v10  ;;  %v66_v15 = vmul.f32 %v57_v8, %v54_v4 }
  0x2b   :  { %v65_v16 = vmul.f32 0.6931472, %v140_v13  ;;  %v67_v17 = vmul.f32 %v59_v11, %v55_v5 }
  0x2c   :  { %v70_v18 = vmul.f32 %v68_v9, %v63_v14 }
  0x2d   :  { %v71_v19 = vmul.f32 %v69_v12, %v65_v16 }
  0x2e   :  { %v72_v20 = vadd.f32 %v70_v18, %v66_v15 }
  0x2f   :  { %v73_v21 = vadd.f32 %v71_v19, %v67_v17 }
  0x30   :  { %v74_v22 = vsub.f32 0.0, %v72_v20 }
  0x31   :  { %v75_v23 = vsub.f32 0.0, %v73_v21 }
  0x32   :  { %v89_v24 = vcombine.high %v74_v22, %v74_v22  ;;  %v94_v25 = vsel %vm93_vm0, %v74_v22, 0.0 }
  0x33   :  { %v90_v26 = vcombine.high %v75_v23, %v75_v23  ;;  %v97_v28 = vsel %vm93_vm0, %v75_v23, 0.0 }
  0x34   :  { %v95_v27 = vsel %vm93_vm0, %v89_v24, 0.0 }
  0x35   :  { %v96_v29 = vadd.f32 %v95_v27, %v94_v25  ;;  %v99_v30 = vsel %vm93_vm0, %v90_v26, 0.0 }
  0x37   :  { %v98_v31 = vadd.f32 %v97_v28, %v96_v29 }
  0x39   :  { %v100_v32 = vadd.f32 %v99_v30, %v98_v31 }
  0x3b   :  { %101 = vadd.xlane.f32.xlu0 %v100_v32 }
  0xc4   :  { %v102_v33 = vpop.xlane.xlu0 %101 }
  0xc5   :  { %v103_v34 = vrot.slane %v102_v33, 4 }
  0xc7   :  { %v104_v35 = vadd.f32 %v103_v34, %v102_v33 }
  0xc9   :  { %v105_v36 = vrot.slane %v104_v35, 2 }
  0xcb   :  { %v106_v37 = vadd.f32 %v105_v36, %v104_v35 }
  0xcd   :  { %v107_v38 = vrot.slane %v106_v37, 1 }
  0xcf   :  { %v108_v39 = vadd.f32 %v107_v38, %v106_v37 }
  0xd1   :  { %128 = vpush %v108_v39 }
 0x102   :  { %s129_s19 = spop %128 }
 0x103   :  { %v110_v40 = vstv %s129_s19 }
 0x104   :  { %111 = vst [vmem:[#allocation8] sm:$0xff] %v110_v40 }
 0x105   :  { %192 = shalt.err (!%p189_p0)
}
 0x106   :  { %121 = dma.vmem_to_hbm [thread:$0]  %s119_s1, 128, %s236_s2, [#allocation5]  }
 0x107   :  { %205 = dma.done.wait [#allocation5], 128  }
 0x108   :  { %206 = vsyncadd [#allocation5], 4294967168 }
 0x109   :  { %125 = vsyncpa [#allocation4], 1 }
 0x10a   :  { %126 = vsyncpa [#allocation7], 1 }
 0x10b   :  { %127 = vsyncpa [#allocation5], 1 }

</bundles_post_ra>
